<compile_context>
chip_gen: v6e
topology: v6e:2x2x1
jax: 0.10.0
libtpu: 0.0.40
codegen_flags: <defaults>
</compile_context>

<pallas_src>
import jax
import jax.numpy as jnp
from jax.experimental import pallas as pl
from jax.experimental.pallas import tpu as pltpu
import numpy as np


def _pool_matrix_np(in_size: int) -> np.ndarray:
    """(in_size//2, in_size) matrix implementing 1-D average pooling k=2, s=2
    (matches nn.AvgPool2d(kernel_size=2): trailing row/col dropped if odd)."""
    out = in_size // 2
    P = np.zeros((out, in_size), dtype=np.float32)
    idx = np.arange(out)
    P[idx, 2 * idx] = 0.5
    P[idx, 2 * idx + 1] = 0.5
    return P


def _upsample_matrix_np(out_size: int, in_size: int) -> np.ndarray:
    """(out_size, in_size) matrix for 1-D bilinear upsampling matching
    torch.nn.functional.interpolate(..., mode='bilinear', align_corners=False)
    (half-pixel centers, src clamped to >= 0)."""
    A = np.zeros((out_size, in_size), dtype=np.float32)
    scale = in_size / out_size
    for i in range(out_size):
        src = (i + 0.5) * scale - 0.5
        src = max(src, 0.0)
        i0 = int(np.floor(src))
        i0 = min(i0, in_size - 1)
        i1 = min(i0 + 1, in_size - 1)
        lam = src - i0
        A[i, i0] += 1.0 - lam
        A[i, i1] += lam
    return A


def _choose_plane_batch(N: int, H: int, W: int, itemsize: int) -> int:
    """Largest divisor of N that (a) keeps the double-buffered VMEM footprint of
    the x / F_H / F_L blocks around ~8 MiB (safe on v7x's 64 MiB VMEM) and
    (b) leaves >= 2 grid steps so the grid can shard across TensorCores."""
    budget = 8 * 1024 * 1024
    # x + F_H + F_L blocks, each double-buffered, plus f32 intermediates.
    per_plane = int(6.0 * H * W * itemsize) + 1
    cap = max(1, budget // per_plane)
    if N >= 2:
        cap = min(cap, N // 2)
    cap = max(1, min(cap, N))
    tb = 1
    for d in range(1, cap + 1):
        if N % d == 0:
            tb = d
    return tb


def _seperation_kernel(x_ref, ph_ref, pwt_ref, ah_ref, awt_ref, fh_ref, fl_ref):
    tb, hh, ww = x_ref.shape        # (TB, H, W)
    hp = ph_ref.shape[0]            # H // 2
    wp = pwt_ref.shape[1]           # W // 2

    x = x_ref[...]                  # (TB, H, W), input dtype
    ph = ph_ref[...]                # (hp, H)
    pw_t = pwt_ref[...]             # (W, wp)   pre-transposed on host
    ah = ah_ref[...]                # (H, hp)
    aw_t = awt_ref[...]             # (wp, W)   pre-transposed on host

    # ---- 2x2 average pool (separable): W contraction, then H contraction ----
    # W side: one 2-D MXU matmul over the flattened (TB*H, W) slab.
    xw = jnp.dot(x.reshape(tb * hh, ww), pw_t,
                 preferred_element_type=jnp.float32)             # (TB*H, wp)
    xw = xw.reshape(tb, hh, wp).astype(x.dtype)
    # H side: batched matmul, pooling operator broadcast over the plane batch.
    ph_b = jnp.broadcast_to(ph, (tb, hp, hh))
    fl32 = jnp.einsum("bph,bhw->bpw", ph_b, xw,
                      preferred_element_type=jnp.float32)        # (TB, hp, wp)
    fl = fl32.astype(fl_ref.dtype)

    # ---- x2 bilinear upsample (align_corners=False): W side, then H side ----
    fw = jnp.dot(fl.reshape(tb * hp, wp), aw_t,
                 preferred_element_type=jnp.float32)             # (TB*hp, W)
    fw = fw.reshape(tb, hp, ww).astype(x.dtype)
    ah_b = jnp.broadcast_to(ah, (tb, hh, hp))
    fup = jnp.einsum("bih,bhw->biw", ah_b, fw,
                     preferred_element_type=jnp.float32)         # (TB, H, W)

    # ---- residual (VPU) ----
    fh_ref[...] = (x.astype(jnp.float32) - fup).astype(fh_ref.dtype)
    fl_ref[...] = fl


def seperation_pallas(x: jnp.ndarray):
    """x: (B, C, H, W). Returns (F_H, F_L) like the torch module."""
    B, C, H, W = x.shape
    h, w = H // 2, W // 2
    assert h >= 1 and w >= 1, "spatial dims must be >= 2 for 2x2 pooling"
    N = B * C
    dt = x.dtype

    # Separable operators; the W-side ones are pre-transposed on the host so
    # the kernel never transposes a loaded tile.
    ph = jnp.asarray(_pool_matrix_np(H), dtype=dt)                       # (h, H)
    pw_t = jnp.asarray(_pool_matrix_np(W).T.copy(), dtype=dt)            # (W, w)
    ah = jnp.asarray(_upsample_matrix_np(H, h), dtype=dt)                # (H, h)
    aw_t = jnp.asarray(_upsample_matrix_np(W, w).T.copy(), dtype=dt)     # (w, W)

    TB = _choose_plane_batch(N, H, W, x.dtype.itemsize)
    xr = x.reshape(N, H, W)

    fh, fl = pl.pallas_call(
        _seperation_kernel,
        out_shape=(
            jax.ShapeDtypeStruct((N, H, W), dt),
            jax.ShapeDtypeStruct((N, h, w), dt),
        ),
        grid_spec=pltpu.PrefetchScalarGridSpec(
            num_scalar_prefetch=0,
            grid=(N // TB,),
            in_specs=[
                pl.BlockSpec((TB, H, W), lambda i: (i, 0, 0)),
                pl.BlockSpec((h, H), lambda i: (0, 0)),
                pl.BlockSpec((W, w), lambda i: (0, 0)),
                pl.BlockSpec((H, h), lambda i: (0, 0)),
                pl.BlockSpec((w, W), lambda i: (0, 0)),
            ],
            out_specs=[
                pl.BlockSpec((TB, H, W), lambda i: (i, 0, 0)),
                pl.BlockSpec((TB, h, w), lambda i: (i, 0, 0)),
            ],
        ),
        compiler_params=pltpu.CompilerParams(
            dimension_semantics=("parallel",),
            vmem_limit_bytes=48 * 1024 * 1024,
        ),
    )(xr, ph, pw_t, ah, aw_t)

    return fh.reshape(B, C, H, W), fl.reshape(B, C, h, w)


def _reference(x):
    """Pure-JAX reference (same linear-operator formulation) for validation."""
    B, C, H, W = x.shape
    h, w = H // 2, W // 2
    ph = jnp.asarray(_pool_matrix_np(H))
    pw = jnp.asarray(_pool_matrix_np(W))
    ah = jnp.asarray(_upsample_matrix_np(H, h))
    aw = jnp.asarray(_upsample_matrix_np(W, w))
    xf = x.astype(jnp.float32)
    fl = jnp.einsum("ph,bchw,qw->bcpq", ph, xf, pw)
    fup = jnp.einsum("hp,bcpq,wq->bchw", ah, fl, aw)
    return (xf - fup).astype(x.dtype), fl.astype(x.dtype)


if __name__ == "__main__":
    key = jax.random.PRNGKey(0)
    B, C, H, W = 2, 4, 16, 16
    x = jax.random.normal(key, (B, C, H, W), dtype=jnp.float32)

    f_h, f_l = seperation_pallas(x)
    f_h = jax.block_until_ready(f_h)
    f_l = jax.block_until_ready(f_l)

    ref_h, ref_l = _reference(x)
    assert f_h.shape == (B, C, H, W) and f_l.shape == (B, C, H // 2, W // 2)
    np.testing.assert_allclose(np.asarray(f_h), np.asarray(ref_h), atol=1e-5, rtol=1e-5)
    np.testing.assert_allclose(np.asarray(f_l), np.asarray(ref_l), atol=1e-5, rtol=1e-5)

    print("KERNEL_OK")
</pallas_src>

<mosaic_0001>
module attributes {stable_mosaic.version = 11 : i64} {
  func.func @_seperation_kernel(%arg0: i32, %arg1: memref<4x16x16xf32, #tpu.memory_space<vmem>>, %arg2: memref<8x16xf32, #tpu.memory_space<vmem>>, %arg3: memref<16x8xf32, #tpu.memory_space<vmem>>, %arg4: memref<16x8xf32, #tpu.memory_space<vmem>>, %arg5: memref<8x16xf32, #tpu.memory_space<vmem>>, %arg6: memref<4x16x16xf32, #tpu.memory_space<vmem>>, %arg7: memref<4x8x8xf32, #tpu.memory_space<vmem>>) attributes {dimension_semantics = [#tpu.dimension_semantics<parallel>], iteration_bounds = array<i64: 2>, scalar_prefetch = 0 : i64, scratch_operands = 0 : i64, tpu.core_type = #tpu.core_type<tc>, window_params = [{transform_indices = @transform_0, window_bounds = array<i64: 4, 16, 16>}, {pipeline_mode = #tpu.pipeline_mode<synchronous>, transform_indices = @transform_1, window_bounds = array<i64: 8, 16>}, {pipeline_mode = #tpu.pipeline_mode<synchronous>, transform_indices = @transform_2, window_bounds = array<i64: 16, 8>}, {pipeline_mode = #tpu.pipeline_mode<synchronous>, transform_indices = @transform_3, window_bounds = array<i64: 16, 8>}, {pipeline_mode = #tpu.pipeline_mode<synchronous>, transform_indices = @transform_4, window_bounds = array<i64: 8, 16>}, {transform_indices = @transform_5, window_bounds = array<i64: 4, 16, 16>}, {transform_indices = @transform_6, window_bounds = array<i64: 4, 8, 8>}]} {
    %c0 = arith.constant 0 : index
    %c0_0 = arith.constant 0 : index
    %c0_1 = arith.constant 0 : index
    %0 = vector.load %arg1[%c0, %c0_0, %c0_1] : memref<4x16x16xf32, #tpu.memory_space<vmem>>, vector<4x16x16xf32>
    %c0_2 = arith.constant 0 : index
    %c0_3 = arith.constant 0 : index
    %1 = vector.load %arg2[%c0_2, %c0_3] : memref<8x16xf32, #tpu.memory_space<vmem>>, vector<8x16xf32>
    %c0_4 = arith.constant 0 : index
    %c0_5 = arith.constant 0 : index
    %2 = vector.load %arg3[%c0_4, %c0_5] : memref<16x8xf32, #tpu.memory_space<vmem>>, vector<16x8xf32>
    %c0_6 = arith.constant 0 : index
    %c0_7 = arith.constant 0 : index
    %3 = vector.load %arg4[%c0_6, %c0_7] : memref<16x8xf32, #tpu.memory_space<vmem>>, vector<16x8xf32>
    %c0_8 = arith.constant 0 : index
    %c0_9 = arith.constant 0 : index
    %4 = vector.load %arg5[%c0_8, %c0_9] : memref<8x16xf32, #tpu.memory_space<vmem>>, vector<8x16xf32>
    %5 = vector.shape_cast %0 : vector<4x16x16xf32> to vector<64x16xf32>
    %cst = arith.constant dense<0.000000e+00> : vector<64x8xf32>
    %6 = tpu.matmul %5, %2, %cst {dimension_numbers = #tpu.dot_dimension_numbers<[1], [0], [0], [1], [0, 0, 1, 1], [], []>} : vector<64x16xf32>, vector<16x8xf32>, vector<64x8xf32> -> vector<64x8xf32>
    %7 = vector.shape_cast %6 : vector<64x8xf32> to vector<4x16x8xf32>
    %8 = vector.shape_cast %1 : vector<8x16xf32> to vector<1x8x16xf32>
    %9 = vector.broadcast %8 : vector<1x8x16xf32> to vector<4x8x16xf32>
    "tpu.trace_start"() <{level = 10 : i32, message = "bph,bhw->bpw"}> : () -> ()
    %cst_10 = arith.constant dense<0.000000e+00> : vector<4x8x8xf32>
    %10 = tpu.matmul %9, %7, %cst_10 {dimension_numbers = #tpu.dot_dimension_numbers<[2], [1], [1], [2], [0, 0, 0, 1, 1, 2], [0], [0]>} : vector<4x8x16xf32>, vector<4x16x8xf32>, vector<4x8x8xf32> -> vector<4x8x8xf32>
    "tpu.trace_stop"() : () -> ()
    %11 = vector.shape_cast %10 : vector<4x8x8xf32> to vector<32x8xf32>
    %cst_11 = arith.constant dense<0.000000e+00> : vector<32x16xf32>
    %12 = tpu.matmul %11, %4, %cst_11 {dimension_numbers = #tpu.dot_dimension_numbers<[1], [0], [0], [1], [0, 0, 1, 1], [], []>} : vector<32x8xf32>, vector<8x16xf32>, vector<32x16xf32> -> vector<32x16xf32>
    %13 = vector.shape_cast %12 : vector<32x16xf32> to vector<4x8x16xf32>
    %14 = vector.shape_cast %3 : vector<16x8xf32> to vector<1x16x8xf32>
    %15 = vector.broadcast %14 : vector<1x16x8xf32> to vector<4x16x8xf32>
    "tpu.trace_start"() <{level = 10 : i32, message = "bih,bhw->biw"}> : () -> ()
    %cst_12 = arith.constant dense<0.000000e+00> : vector<4x16x16xf32>
    %16 = tpu.matmul %15, %13, %cst_12 {dimension_numbers = #tpu.dot_dimension_numbers<[2], [1], [1], [2], [0, 0, 0, 1, 1, 2], [0], [0]>} : vector<4x16x8xf32>, vector<4x8x16xf32>, vector<4x16x16xf32> -> vector<4x16x16xf32>
    "tpu.trace_stop"() : () -> ()
    %17 = arith.subf %0, %16 : vector<4x16x16xf32>
    %c0_13 = arith.constant 0 : index
    %c0_14 = arith.constant 0 : index
    %c0_15 = arith.constant 0 : index
    %18 = vector.load %arg6[%c0_13, %c0_14, %c0_15] : memref<4x16x16xf32, #tpu.memory_space<vmem>>, vector<4x16x16xf32>
    tpu.vector_store %arg6[%c0_13, %c0_14, %c0_15], %17 {strides = array<i32>} : memref<4x16x16xf32, #tpu.memory_space<vmem>>, vector<4x16x16xf32>,
    %c0_16 = arith.constant 0 : index
    %c0_17 = arith.constant 0 : index
    %c0_18 = arith.constant 0 : index
    %19 = vector.load %arg7[%c0_16, %c0_17, %c0_18] : memref<4x8x8xf32, #tpu.memory_space<vmem>>, vector<4x8x8xf32>
    tpu.vector_store %arg7[%c0_16, %c0_17, %c0_18], %10 {strides = array<i32>} : memref<4x8x8xf32, #tpu.memory_space<vmem>>, vector<4x8x8xf32>,
    return
  }
  func.func @transform_0(%arg0: i32) -> (i32, i32, i32) {
    %c0_i32 = arith.constant 0 : i32
    %c0_i32_0 = arith.constant 0 : i32
    %c0_i32_1 = arith.constant 0 : i32
    return %arg0, %c0_i32, %c0_i32_0 : i32, i32, i32
  }
  func.func @transform_1(%arg0: i32) -> (i32, i32) {
    %c0_i32 = arith.constant 0 : i32
    %c0_i32_0 = arith.constant 0 : i32
    %c0_i32_1 = arith.constant 0 : i32
    return %c0_i32, %c0_i32_0 : i32, i32
  }
  func.func @transform_2(%arg0: i32) -> (i32, i32) {
    %c0_i32 = arith.constant 0 : i32
    %c0_i32_0 = arith.constant 0 : i32
    %c0_i32_1 = arith.constant 0 : i32
    return %c0_i32, %c0_i32_0 : i32, i32
  }
  func.func @transform_3(%arg0: i32) -> (i32, i32) {
    %c0_i32 = arith.constant 0 : i32
    %c0_i32_0 = arith.constant 0 : i32
    %c0_i32_1 = arith.constant 0 : i32
    return %c0_i32, %c0_i32_0 : i32, i32
  }
  func.func @transform_4(%arg0: i32) -> (i32, i32) {
    %c0_i32 = arith.constant 0 : i32
    %c0_i32_0 = arith.constant 0 : i32
    %c0_i32_1 = arith.constant 0 : i32
    return %c0_i32, %c0_i32_0 : i32, i32
  }
  func.func @transform_5(%arg0: i32) -> (i32, i32, i32) {
    %c0_i32 = arith.constant 0 : i32
    %c0_i32_0 = arith.constant 0 : i32
    %c0_i32_1 = arith.constant 0 : i32
    return %arg0, %c0_i32, %c0_i32_0 : i32, i32, i32
  }
  func.func @transform_6(%arg0: i32) -> (i32, i32, i32) {
    %c0_i32 = arith.constant 0 : i32
    %c0_i32_0 = arith.constant 0 : i32
    %c0_i32_1 = arith.constant 0 : i32
    return %arg0, %c0_i32, %c0_i32_0 : i32, i32, i32
  }
}

</mosaic_0001>

<bundles_post_ra>
// kernel: tpu_custom_call.1
= control target key start
LH: loop header
LB: loop body
LE: loop exit
PB: predicated region body
PF: predicated region fallthrough
CT: control target
= control target key end

     0   :  { %12 = vsyncpa [#allocation3], 0  ;;  %s1953_s0 = inlined_call_operand.hbm [shape: f32[8,16,16], index: 0, kind: input, shape index: {}]   ;;  %s1954_s1 = inlined_call_operand.vmem [shape: f32[8,16], index: 1, kind: input, shape index: {}]   ;;  %s1955_s2 = inlined_call_operand.vmem [shape: f32[16,8], index: 2, kind: input, shape index: {}]   ;;  %s1956_s3 = inlined_call_operand.vmem [shape: f32[16,8], index: 3, kind: input, shape index: {}]   ;;  %s1957_s4 = inlined_call_operand.vmem [shape: f32[8,16], index: 4, kind: input, shape index: {}]   ;;  %s1958_s5 = inlined_call_operand.hbm [shape: f32[8,16,16], index: 5, kind: output, shape index: {0}]   ;;  %s1959_s6 = inlined_call_operand.hbm [shape: f32[8,8,8], index: 6, kind: output, shape index: {1}]  }
   0x1   :  { %14 = vsyncpa [#allocation3 + $0x1], 0 }
   0x2   :  { %15 = vsyncpa [#allocation4], 0 }
   0x3   :  { %17 = vsyncpa [#allocation4 + $0x1], 0 }
   0x4   :  { %18 = vsyncpa [#allocation7], 0 }
   0x5   :  { %20 = vsyncpa [#allocation7 + $0x1], 0  ;;  %s1662_s21 = smov 0   ;;  %s1664_s22 = smov 0  }
   0x6   :  { %s1666_s23 = smov 0   ;;  %s1668_s24 = smov 0  }
   0x7 LB: > { %s1683_s25 = sadd.s32 4294967295, %s1616_s24   ;;  %s1277_s26 = sadd.s32 4294967294, %s1616_s24   ;;  %s1616_s24 = sphi %s1668_s24, %s1974_s24   ;;  %s1612_s23 = sphi %s1666_s23, %s1973_s23   ;;  %s1608_s22 = sphi %s1664_s22, %s1972_s22   ;;  %s1604_s21 = sphi %s1662_s21, %s1971_s21  }
   0x8   : > { %s1687_s27 = sadd.s32 1, %s1616_s24   ;;  %s33_s28 = sadd.s32 1, %s1612_s23 }
   0x9   : > { %s30_s29 = ssub.s32 %s1616_s24, %s1687_s27  ;;  %p40_p0 = scmp.ne.s32.totalorder %s1612_s23, %s1608_s22 }
   0xa   : > { %p31_p1 = scmp.eq.s32.totalorder %s30_s29, 0  ;;  %p41_p2 = scmp.eq.s32.totalorder %s1616_s24, 0 }
   0xb   : > { %p46_p3 = scmp.ne.s32.totalorder %s1608_s22, %s1604_s21  ;;  %p47_p4 = scmp.eq.s32.totalorder %s1683_s25, 0 }
   0xc   : > { %s1699_s30 = scalar_select %p31_p1, %s1612_s23, %s33_s28  }
   0xd   : > { %p1701_p5 = por %p41_p2, %p40_p0  ;;  %p1705_p6 = por %p47_p4, %p46_p3 }
   0xe   : > { %p154_p7 = scmp.eq.s32.totalorder %s1683_s25, 1  ;;  %p160_p8 = scmp.eq.s32.totalorder %s1277_s26, 1 }
   0xf   : > { %s1963_s8 = scalar_select %p1705_p6, 1, 0 }
  0x10   : > { %p1454_p10 = scmp.lt.s32.totalorder %s1616_s24, 2  ;;  %p1712_p11 = por %p154_p7, %p40_p0 }
  0x11   : > { %p1716_p12 = por %p160_p8, %p46_p3  ;;  %s218_s11 = sand.u32 1, %s1612_s23  }
  0x12   : > { %s1964_s9 = scalar_select %p1712_p11, 1, 0 }
  0x13   : > { %s1965_s10 = scalar_select %p1716_p12, 1, 0 }
  0x14   : > { %s1322_s12 = sshll.u32 %s1616_s24, 10  ;;  %s1280_s13 = sshll.u32 %s218_s11, 6 }
  0x15   : > { %s1725_s16 = scalar_lea.hbm %s1953_s0, %s1322_s12  ;;  %s222_s17 = scalar_lea.vmem [#allocation2], %s1280_s13 }
  0x16   : > { %s230_s18 = sshll.u32 %s222_s17, 4  ;;  %p1729_p13 = pnand %p1454_p10, %p1701_p5  ;;  %s1733_s18 = int_to_ptr.vmem [resolvable:$true] %s230_s18 }
  0x17   : > { %s1735_s20 = scalar_lea.sflag [#allocation3], %s218_s11  ;;  %s1494_s26 = scalar_lea.hbm %s1725_s16, 1024 }
  0x18   : > { %p1495_p0 = scmp.ne.s32.totalorder %s1725_s16, %s1494_s26  ;;  %p1496_p1 = pneg %p1729_p13 }
  0x19   : > { %s1499_s12 = scalar_lea.hbm %s1953_s0, 2048  ;;  %p1500_p4 = scmp.lt.s32.totalorder %s1725_s16, %s1953_s0 }
  0x1a   : > { %p1497_p2 = pnand %p1496_p1, %p1495_p0  ;;  %p1501_p5 = scmp.lt.s32.totalorder %s1499_s12, %s1494_s26 }
  0x1c   : > { %p1498_p3 = pneg %p1497_p2  ;;  %p1502_p7 = por %p1501_p5, %p1500_p4 }
  0x1e   : > { %p1503_p8 = pnand %p1502_p7, %p1498_p3 }
  0x20   : > { %1506 = shalt.err (!%p1503_p8)
}
  0x21   : > { %s1507_s11 = scalar_lea.vmem %s1733_s18, 1024  ;;  %s1618_s14 = smov [#allocation2]  }
  0x22   : > { %p1508_p10 = scmp.ne.s32.totalorder %s1733_s18, %s1507_s11  ;;  %s1512_s15 = sshll.u32 %s1618_s14, 4  ;;  %s1513_s15 = int_to_ptr.vmem [resolvable:$false] %s1512_s15 }
  0x23   : > { %s1514_s17 = scalar_lea.vmem %s1513_s15, 2048  ;;  %p1515_p2 = scmp.lt.s32.totalorder %s1733_s18, %s1513_s15 }
  0x24   : > { %p1510_p9 = pnand %p1508_p10, %p1496_p1  ;;  %p1516_p12 = scmp.lt.s32.totalorder %s1514_s17, %s1507_s11 }
  0x26   : > { %p1511_p0 = pneg %p1510_p9  ;;  %p1517_p11 = por %p1516_p12, %p1515_p2 }
  0x28   : > { %p1518_p6 = pnand %p1517_p11, %p1511_p0 }
  0x2a   : > { %1521 = shalt.err (!%p1518_p6)
}
  0x2b   : > { %s1619_s26 = smov 128   ;;  %s1620_s28 = smov 8  }
  0x2c   : > { %1446 = dma.hbm_to_vmem [thread:$0]  (!%p1729_p13), %s1725_s16, 1024, %s1733_s18, %s1735_s20, %s1619_s26, %s1619_s26, %s1620_s28  }
  0x2d   : > { %p1284_p9 = scmp.ge.s32.totalorder %s1616_s24, 1  ;;  %p238_p1 = scmp.lt.s32.totalorder %s1616_s24, 3 }
  0x2f   : > { %p239_p3 = pnand %p1284_p9, %p238_p1 }
  0x30   : > { %s1759_s29 = sand.u32 (!%p239_p3), 1, %s1608_s22   ;;  %p1967_p6 = scmp.ne.s32.totalorder (!%p239_p3), %s1963_s8, 0 }
  0x31   : > { %242 = sbr.rel (%p239_p3) target bundleno = 868 (0x364), region = 40  ;;  %s1285_s12 = sshll.u32 (!%p239_p3), %s1759_s29, 6 }
  0x32   : > { %s245_s7 = scalar_lea.sflag (!%p239_p3), [#allocation3], %s1759_s29  ;;  %s248_s13 = scalar_lea.vmem (!%p239_p3), [#allocation2], %s1285_s12 }
  0x36   : > { %1591 = dma.done.wait (%p1967_p6), %s245_s7, 1024  }
  0x37   : > { %1593 = vsyncadd (%p1967_p6), %s245_s7, 4294966272  ;;  %vm299_vm0 = vcmask 130048   ;;  %v295_v0 = vld [vmem:[%s1955_s2 + $0x8] sm:$0xff]  ;;  %v294_v1 = vld [vmem:[%s1955_s2] sm:$0xff]  ;;  %v1621_v10 = vmov 0.0   ;;  %vm1622_vm1 = vmmov 0  }
  0x38   : > { %v1775_v2 = vld [vmem:[%s248_s13] sm:$0xff]  ;;  %1365 = vmatprep.subr.mxu0 %v295_v0  ;;  %v1779_v3 = vld [vmem:[%s248_s13 + $0x8] sm:$0xff]  ;;  %v1781_v4 = vld [vmem:[%s248_s13 + $0x10] sm:$0xff]  ;;  %1381 = vmatprep.subr.mxu1 %v1621_v10  ;;  %s1287_s17 = sshll.u32 %s1759_s29, 5  ;;  %vm712_vm2 = vcmask 64512   ;;  %s1325_s19 = sshll.u32 %s1683_s25, 9 }
  0x39   : > { %1369 = vmatprep.mubr.msk.f32.mxu0 %vm299_vm0, %v1775_v2  ;;  %1366 = vmatpush3.msra.mxu0 %v295_v0  ;;  %v1787_v5 = vld [vmem:[%s248_s13 + $0x18] sm:$0xff]  ;;  %v1789_v6 = vld [vmem:[%s248_s13 + $0x20] sm:$0xff]  ;;  %v1795_v7 = vld [vmem:[%s248_s13 + $0x28] sm:$0xff]  ;;  %s1822_s26 = scalar_lea.vmem [#allocation6], %s1287_s17  ;;  %s1857_s11 = scalar_lea.hbm %s1959_s6, %s1325_s19 }
  0x3a   : > { %1367 = vmatprep.subr.mxu0 %v294_v1  ;;  %v1797_v8 = vld [vmem:[%s248_s13 + $0x30] sm:$0xff]  ;;  %v1803_v9 = vld [vmem:[%s248_s13 + $0x38] sm:$0xff]  ;;  %1385 = vmatprep.mubr.msk.f32.mxu1 %vm1622_vm1, %v1621_v10  ;;  %v298_v11 = vld [vmem:[%s1957_s4] sm:$0xff]  ;;  %s1172_s18 = sshll.u32 %s1822_s26, 4  ;;  %s1142_s14 = scalar_lea.sflag [#allocation7], %s1759_s29  ;;  %s1851_s18 = int_to_ptr.vmem [resolvable:$true] %s1172_s18 }
  0x3b   : > { %1368 = vmatpush3.msra.mxu0 %v294_v1  ;;  %v293_v13 = vld [vmem:[%s1954_s1] sm:$0xff]  ;;  %v297_v32 = vld [vmem:[%s1956_s3 + $0x8] sm:$0xff]  ;;  %s1522_s15 = scalar_lea.vmem %s1851_s18, 512  ;;  %p1968_p12 = scmp.ne.s32.totalorder %s1964_s9, 0 }
  0x3c   : > { %1370 = vmatmul.mubr.msk.f32.vlgmr.msra.gmra.mxu0 %vm299_vm0, %v1779_v3  ;;  %1409 = vmatprep.subr.mxu0 %v298_v11  ;;  %v296_v29 = vld [vmem:[%s1956_s3] sm:$0xff]  ;;  %p1523_p11 = scmp.ne.s32.totalorder %s1851_s18, %s1522_s15  ;;  %s1623_s17 = smov [#allocation6]  }
  0x3d   : > { %1372 = vmatprep.mubr.msk.f32.mxu0 %vm299_vm0, %v1781_v4  ;;  %1410 = vmatpush3.msra.mxu0 %v298_v11  ;;  %s1526_s28 = sshll.u32 %s1623_s17, 4  ;;  %s1527_s28 = int_to_ptr.vmem [resolvable:$false] %s1526_s28 }
  0x3e   : > { %p1524_p13 = pnand %p1523_p11, %p1968_p12  ;;  %p1529_p5 = scmp.lt.s32.totalorder %s1851_s18, %s1527_s28 }
  0x40   : > { %1373 = vmatmul.mubr.msk.f32.gmra.mxu0 %vm299_vm0, %v1787_v5  ;;  %p1525_p4 = pneg %p1524_p13 }
  0x41   : > { %1375 = vmatprep.mubr.msk.f32.mxu0 %vm299_vm0, %v1789_v6 }
  0x44   : > { %1376 = vmatmul.mubr.msk.f32.gmra.mxu0 %vm299_vm0, %v1795_v7 }
  0x45   : > { %1378 = vmatprep.mubr.msk.f32.mxu0 %vm299_vm0, %v1797_v8 }
  0x48   : > { %1379 = vmatmul.mubr.msk.f32.gmra.mxu0 %vm299_vm0, %v1803_v9 }
  0xfc   : > { %v1371_v12 = vpop.f32.mrf.mxu0 }
  0xfd   : > { %1382 = vmatpush3.msra.mxu1 %v1371_v12 }
  0xfe   : > { %v390_v14 = vpop.f32.mrf.mxu0  ;;  %1383 = vmatprep.subr.mxu1 %v1621_v10 }
  0xff   : > { %1384 = vmatpush3.msra.mxu1 %v390_v14 }
 0x100   : > { %v1374_v15 = vpop.f32.mrf.mxu0  ;;  %1386 = vmatmul.mubr.msk.f32.vlgmr.msra.gmra.mxu1 %vm299_vm0, %v293_v13  ;;  %1388 = vmatprep.subr.mxu1 %v1621_v10 }
 0x101   : > { %1389 = vmatpush3.msra.mxu1 %v1374_v15  ;;  %1392 = vmatprep.mubr.msk.f32.mxu1 %vm1622_vm1, %v1621_v10 }
 0x102   : > { %v400_v16 = vpop.f32.mrf.mxu0  ;;  %1390 = vmatprep.subr.mxu1 %v1621_v10 }
 0x103   : > { %1391 = vmatpush3.msra.mxu1 %v400_v16 }
 0x104   : > { %v1377_v17 = vpop.f32.mrf.mxu0  ;;  %1393 = vmatmul.mubr.msk.f32.vlgmr.msra.gmra.mxu1 %vm299_vm0, %v293_v13  ;;  %1395 = vmatprep.subr.mxu1 %v1621_v10 }
 0x105   : > { %1396 = vmatpush3.msra.mxu1 %v1377_v17  ;;  %1399 = vmatprep.mubr.msk.f32.mxu1 %vm1622_vm1, %v1621_v10 }
 0x106   : > { %v410_v18 = vpop.f32.mrf.mxu0  ;;  %1397 = vmatprep.subr.mxu1 %v1621_v10 }
 0x107   : > { %1398 = vmatpush3.msra.mxu1 %v410_v18 }
 0x108   : > { %v1380_v19 = vpop.f32.mrf.mxu0  ;;  %1400 = vmatmul.mubr.msk.f32.vlgmr.msra.gmra.mxu1 %vm299_vm0, %v293_v13  ;;  %1402 = vmatprep.subr.mxu1 %v1621_v10 }
 0x109   : > { %1403 = vmatpush3.msra.mxu1 %v1380_v19  ;;  %1406 = vmatprep.mubr.msk.f32.mxu1 %vm1622_vm1, %v1621_v10 }
 0x10a   : > { %v420_v20 = vpop.f32.mrf.mxu0  ;;  %1404 = vmatprep.subr.mxu1 %v1621_v10 }
 0x10b   : > { %1405 = vmatpush3.msra.mxu1 %v420_v20 }
 0x10c   : > { %1407 = vmatmul.mubr.msk.f32.vlgmr.msra.gmra.mxu1 %vm299_vm0, %v293_v13 }
 0x10d   : > { %1419 = vmatprep.mubr.msk.f32.mxu1 %vm712_vm2, %v296_v29 }
 0x1c0   : > { %v498_v21 = vpop.f32.mrf.mxu1 }
 0x1c1   : > { %1132 = vst.msk [vmem:[%s1822_s26] sm:$0xff] %vm712_vm2, %v498_v21  ;;  %1411 = vmatprep.mubr.msk.f32.mxu0 %vm712_vm2, %v498_v21 }
 0x1c2   : > { %v1387_v22 = vpop.f32.mrf.mxu1 }
 0x1c4   : > { %v568_v23 = vpop.f32.mrf.mxu1 }
 0x1c5   : > { %1133 = vst.msk [vmem:[%s1822_s26 + $0x8] sm:$0xff] %vm712_vm2, %v568_v23  ;;  %1412 = vmatmul.mubr.msk.f32.vlgmr.msra.gmra.mxu0 %vm712_vm2, %v568_v23 }
 0x1c6   : > { %v1394_v24 = vpop.f32.mrf.mxu1 }
 0x1c8   : > { %v638_v25 = vpop.f32.mrf.mxu1 }
 0x1c9   : > { %1134 = vst.msk [vmem:[%s1822_s26 + $0x10] sm:$0xff] %vm712_vm2, %v638_v25  ;;  %1414 = vmatprep.mubr.msk.f32.mxu0 %vm712_vm2, %v638_v25 }
 0x1ca   : > { %v1401_v26 = vpop.f32.mrf.mxu1 }
 0x1cc   : > { %v708_v27 = vpop.f32.mrf.mxu1 }
 0x1cd   : > { %1135 = vst.msk [vmem:[%s1822_s26 + $0x18] sm:$0xff] %vm712_vm2, %v708_v27  ;;  %1415 = vmatmul.mubr.msk.f32.gmra.mxu0 %vm712_vm2, %v708_v27  ;;  %s1528_s26 = scalar_lea.vmem %s1527_s28, 1024 }
 0x1ce   : > { %v1408_v28 = vpop.f32.mrf.mxu1  ;;  %1429 = vmatprep.mubr.msk.f32.mxu0 %vm712_vm2, %v296_v29  ;;  %p1530_p7 = scmp.lt.s32.totalorder %s1528_s26, %s1522_s15 }
 0x1d0   : > { %p1531_p8 = por %p1530_p7, %p1529_p5 }
 0x1d2   : > { %p1532_p10 = pnand %p1531_p8, %p1525_p4 }
 0x285   : > { %v1413_v30 = vpop.f32.mrf.mxu0 }
 0x287   : > { %v791_v31 = vpop.f32.mrf.mxu0 }
 0x288   : > { %1417 = vmatprep.subr.mxu1 %v791_v31 }
 0x289   : > { %1418 = vmatpush3.msra.mxu1 %v791_v31 }
 0x28a   : > { %1422 = vmatprep.subr.mxu1 %v1413_v30  ;;  %1420 = vmatmul.mubr.msk.f32.vlgmr.msra.gmra.mxu1 %vm712_vm2, %v297_v32 }
 0x28b   : > { %1423 = vmatpush3.msra.mxu1 %v1413_v30  ;;  %1424 = vmatprep.mubr.msk.f32.mxu1 %vm712_vm2, %v296_v29 }
 0x28d   : > { %v1416_v33 = vpop.f32.mrf.mxu0 }
 0x28e   : > { %1432 = vmatprep.subr.mxu1 %v1416_v33  ;;  %1425 = vmatmul.mubr.msk.f32.vlgmr.msra.gmra.mxu1 %vm712_vm2, %v297_v32 }
 0x28f   : > { %v801_v34 = vpop.f32.mrf.mxu0  ;;  %1433 = vmatpush3.msra.mxu1 %v1416_v33  ;;  %1434 = vmatprep.mubr.msk.f32.mxu1 %vm712_vm2, %v296_v29 }
 0x290   : > { %1427 = vmatprep.subr.mxu0 %v801_v34 }
 0x291   : > { %1428 = vmatpush3.msra.mxu0 %v801_v34 }
 0x292   : > { %1430 = vmatmul.mubr.msk.f32.vlgmr.msra.gmra.mxu0 %vm712_vm2, %v297_v32  ;;  %1435 = vmatmul.mubr.msk.f32.vlgmr.msra.gmra.mxu1 %vm712_vm2, %v297_v32 }
 0x293   : > { %1535 = shalt.err (!%p1532_p10)
}
 0x294   : > { %s1536_s7 = scalar_lea.hbm %s1857_s11, 512  ;;  %s1540_s19 = scalar_lea.hbm %s1959_s6, 1024 }
 0x295   : > { %p1537_p0 = scmp.ne.s32.totalorder %s1857_s11, %s1536_s7  ;;  %p1541_p1 = scmp.lt.s32.totalorder %s1857_s11, %s1959_s6 }
 0x296   : > { %p1542_p3 = scmp.lt.s32.totalorder %s1540_s19, %s1536_s7 }
 0x297   : > { %p1538_p2 = pnand %p1537_p0, %p1968_p12 }
 0x298   : > { %p1543_p6 = por %p1542_p3, %p1541_p1 }
 0x299   : > { %p1539_p9 = pneg %p1538_p2 }
 0x29b   : > { %p1544_p11 = pnand %p1543_p6, %p1539_p9 }
 0x29d   : > { %1547 = shalt.err (!%p1544_p11)
}
 0x29e   : > { %s1624_s15 = smov 128   ;;  %s1625_s17 = smov 8  }
 0x29f   : > { %1440 = dma.vmem_to_hbm [thread:$0]  (%p1968_p12), %s1851_s18, 512, %s1857_s11, %s1142_s14, %s1624_s15, %s1624_s15, %s1625_s17  }
 0x2a0   : > { %s274_s28 = scalar_lea.vmem [#allocation5], %s1285_s12  ;;  %s1324_s18 = sshll.u32 %s1683_s25, 10 }
 0x2a1   : > { %s1156_s11 = sshll.u32 %s274_s28, 4  ;;  %s1905_s14 = scalar_lea.hbm %s1958_s5, %s1324_s18  ;;  %s1907_s11 = int_to_ptr.vmem [resolvable:$true] %s1156_s11 }
 0x2a2   : > { %s1137_s26 = scalar_lea.sflag [#allocation4], %s1759_s29  ;;  %s1548_s7 = scalar_lea.vmem %s1907_s11, 1024 }
 0x2a3   : > { %p1549_p13 = scmp.ne.s32.totalorder %s1907_s11, %s1548_s7  ;;  %s1626_s13 = smov [#allocation5]  }
 0x2a4   : > { %s1552_s16 = sshll.u32 %s1626_s13, 4  ;;  %s1553_s16 = int_to_ptr.vmem [resolvable:$false] %s1552_s16 }
 0x2a5   : > { %p1550_p4 = pnand %p1549_p13, %p1968_p12  ;;  %s1554_s19 = scalar_lea.vmem %s1553_s16, 2048 }
 0x2a6   : > { %p1555_p7 = scmp.lt.s32.totalorder %s1907_s11, %s1553_s16  ;;  %p1556_p8 = scmp.lt.s32.totalorder %s1554_s19, %s1548_s7 }
 0x2a7   : > { %p1551_p5 = pneg %p1550_p4 }
 0x2a8   : > { %p1557_p10 = por %p1556_p8, %p1555_p7 }
 0x2aa   : > { %p1558_p0 = pnand %p1557_p10, %p1551_p5 }
 0x34a   : > { %v1421_v35 = vpop.f32.mrf.mxu1 }
 0x34b   : > { %v1117_v36 = vsub.f32 %v1779_v3, %v1421_v35 }
 0x34c   : > { %v882_v37 = vpop.f32.mrf.mxu1 }
 0x34d   : > { %1125 = vst.msk [vmem:[%s274_s28 + $0x8] sm:$0xff] %vm299_vm0, %v1117_v36  ;;  %v1116_v38 = vsub.f32 %v1775_v2, %v882_v37 }
 0x34e   : > { %v1426_v39 = vpop.f32.mrf.mxu1 }
 0x34f   : > { %1124 = vst.msk [vmem:[%s274_s28] sm:$0xff] %vm299_vm0, %v1116_v38  ;;  %v1119_v40 = vsub.f32 %v1787_v5, %v1426_v39 }
 0x350   : > { %v957_v41 = vpop.f32.mrf.mxu1 }
 0x351   : > { %1127 = vst.msk [vmem:[%s274_s28 + $0x18] sm:$0xff] %vm299_vm0, %v1119_v40  ;;  %v1118_v42 = vsub.f32 %v1781_v4, %v957_v41 }
 0x352   : > { %v1431_v43 = vpop.f32.mrf.mxu0  ;;  %v1436_v44 = vpop.f32.mrf.mxu1 }
 0x353   : > { %1126 = vst.msk [vmem:[%s274_s28 + $0x10] sm:$0xff] %vm299_vm0, %v1118_v42  ;;  %v1121_v45 = vsub.f32 %v1795_v7, %v1431_v43  ;;  %v1123_v46 = vsub.f32 %v1803_v9, %v1436_v44 }
 0x354   : > { %v1032_v47 = vpop.f32.mrf.mxu0  ;;  %v1107_v48 = vpop.f32.mrf.mxu1 }
 0x355   : > { %1129 = vst.msk [vmem:[%s274_s28 + $0x28] sm:$0xff] %vm299_vm0, %v1121_v45  ;;  %1131 = vst.msk [vmem:[%s274_s28 + $0x38] sm:$0xff] %vm299_vm0, %v1123_v46  ;;  %v1120_v49 = vsub.f32 %v1789_v6, %v1032_v47  ;;  %v1122_v50 = vsub.f32 %v1797_v8, %v1107_v48 }
 0x357   : > { %1128 = vst.msk [vmem:[%s274_s28 + $0x20] sm:$0xff] %vm299_vm0, %v1120_v49  ;;  %1130 = vst.msk [vmem:[%s274_s28 + $0x30] sm:$0xff] %vm299_vm0, %v1122_v50 }
 0x358   : > { %1561 = shalt.err (!%p1558_p0)
}
 0x359   : > { %s1562_s20 = scalar_lea.hbm %s1905_s14, 1024  ;;  %s1566_s28 = scalar_lea.hbm %s1958_s5, 2048 }
 0x35a   : > { %p1563_p2 = scmp.ne.s32.totalorder %s1905_s14, %s1562_s20  ;;  %p1567_p3 = scmp.lt.s32.totalorder %s1905_s14, %s1958_s5 }
 0x35b   : > { %p1568_p6 = scmp.lt.s32.totalorder %s1566_s28, %s1562_s20 }
 0x35c   : > { %p1564_p9 = pnand %p1563_p2, %p1968_p12 }
 0x35d   : > { %p1569_p11 = por %p1568_p6, %p1567_p3 }
 0x35e   : > { %p1565_p1 = pneg %p1564_p9 }
 0x360   : > { %p1570_p13 = pnand %p1569_p11, %p1565_p1 }
 0x362   : > { %1573 = shalt.err (!%p1570_p13)
}
 0x363   : > { %1439 = dma.vmem_to_hbm [thread:$0]  (%p1968_p12), %s1907_s11, 1024, %s1905_s14, %s1137_s26, %s1624_s15, %s1624_s15, %s1625_s17  }
 0x364 PF: > { %s1187_s25 = sand.u32 1, %s1604_s21   ;;  %p1969_p4 = scmp.ne.s32.totalorder %s1965_s10, 0 }
 0x365   : > { %p1970_p5 = scmp.ge.s32.totalorder %s1616_s24, 2  ;;  %s1188_s7 = scalar_lea.sflag [#allocation4], %s1187_s25 }
 0x367   : > { %p1448_p7 = pnand %p1970_p5, %p1969_p4 }
 0x369   : > { %p1449_p8 = pneg %p1448_p7 }
 0x36b   : > { %1595 = dma.done.wait (%p1449_p8), %s1188_s7, 1024  }
 0x36c   : > { %1597 = vsyncadd (%p1449_p8), %s1188_s7, 4294966272  ;;  %s1197_s13 = scalar_lea.sflag [#allocation7], %s1187_s25 }
 0x36d   : > { %1599 = dma.done.wait (%p1449_p8), %s1197_s13, 512  }
 0x36e   : > { %1601 = vsyncadd (%p1449_p8), %s1197_s13, 4294966784  ;;  %p23_p12 = scmp.ge.s32.totalorder %s1687_s27, 4   ;;  %s1971_s21 = smov %s1608_s22 }
 0x36f   : > { %s1972_s22 = smov %s1612_s23  ;;  %s1973_s23 = smov %s1699_s30 }
 0x370   : > { %s1974_s24 = smov %s1687_s27  ;;  %25 = sbr.rel (!%p23_p12) target bundleno = 7 (0x7), region = 102 }
 0x375   :  { %1202 = vsyncpa [#allocation3], 1 }
 0x376   :  { %1204 = vsyncpa [#allocation3 + $0x1], 1 }
 0x377   :  { %1205 = vsyncpa [#allocation4], 1 }
 0x378   :  { %1207 = vsyncpa [#allocation4 + $0x1], 1 }
 0x379   :  { %1208 = vsyncpa [#allocation7], 1 }
 0x37a   :  { %1210 = vsyncpa [#allocation7 + $0x1], 1 }

</bundles_post_ra>
